<compile_context>
chip_gen: v5e
topology: v5e:2x2
jax: 0.10.0
libtpu: 0.0.40
codegen_flags: <defaults>
</compile_context>

<pallas_src>
import jax
import jax.numpy as jnp
from jax.experimental import pallas as pl
from jax.experimental.pallas import tpu as pltpu

LANE = 128               # lane width
MIN_ROWS = 8             # sublane granularity (f32 vreg rows)
MAX_BLOCK_ROWS = 4096    # 4096*128*4 B = 2 MiB per input block; x3 inputs x2
                         # pipeline buffers = 12 MiB double-buffered
VMEM_LIMIT_BYTES = 32 * 1024 * 1024  # explicit: v5e default scoped limit is
                                     # only 16 MiB; 32 MiB fits v7x's 64 MiB


def _make_ncc_kernel(tb, m_rows, steps_per_core, steps_total, has_dup):
    """Build the streaming-sums kernel for a fixed (static) tiling."""
    needs_mask = (m_rows % tb) != 0
    last_step = steps_total - 1

    # Two-level reduction tree: split the tb rows into g vreg-aligned groups so
    # the serial VPU add chain per output vreg stays short (latency hidden under
    # the DMA even at tb=4096).
    n_sub = tb // MIN_ROWS
    g = 1
    for cand in (16, 8, 4, 2):
        if n_sub % cand == 0 and n_sub // cand >= cand:
            g = cand
            break

    def reduce_rows(x):
        # (tb, 128) -> (g, n_sub//g, 8, 128) -> (8, 128). Splits only the
        # sublane axis at vreg boundaries: pure VPU adds, no relayout.
        x = x.reshape(g, n_sub // g, MIN_ROWS, LANE)
        return x.sum(axis=1).sum(axis=0)

    def kernel(a_ref, b_ref, c_ref, acc_ref):
        # acc_ref: (8, 8, 128) resident accumulator (per "parallel" core).
        @pl.when(pl.program_id(1) == 0)
        def _():
            acc_ref[...] = jnp.zeros_like(acc_ref)

        step = pl.program_id(0) * steps_per_core + pl.program_id(1)

        def accumulate(mask_rows):
            a = a_ref[...].astype(jnp.float32)
            b = b_ref[...].astype(jnp.float32)
            c = c_ref[...].astype(jnp.float32)
            if mask_rows:
                # Ragged last block: zero rows past the true row count BEFORE
                # any product so unspecified padding never reaches the sums.
                row0 = step * tb
                rows = jax.lax.broadcasted_iota(jnp.int32, (tb, LANE), 0) + row0
                valid = rows < m_rows
                a = jnp.where(valid, a, 0.0)
                b = jnp.where(valid, b, 0.0)
                c = jnp.where(valid, c, 0.0)
            acc_ref[0] += reduce_rows(a)
            acc_ref[1] += reduce_rows(b)
            acc_ref[2] += reduce_rows(c)
            acc_ref[3] += reduce_rows(a * a)
            acc_ref[4] += reduce_rows(b * b)
            acc_ref[5] += reduce_rows(c * c)
            acc_ref[6] += reduce_rows(a * c)
            acc_ref[7] += reduce_rows(b * c)

        if not needs_mask and not has_dup:
            # Fast path: every step is full, no duplicates possible.
            accumulate(False)
        else:
            # Interior steps: unmasked (mask cost only paid on the last step).
            @pl.when(step < last_step)
            def _():
                accumulate(False)

            # Globally-last step: masked only if the last block is ragged.
            @pl.when(step == last_step)
            def _():
                accumulate(needs_mask)

            # step > last_step: duplicate tail step from the cdiv megacore
            # split (its DMA was clamped to the last block) -> skipped.

    return kernel


def _sums8_plain(x, y, z):
    """Plain-JAX 8 sums for tiny tails: sA,sB,sC,sAA,sBB,sCC,sAC,sBC."""
    x = x.astype(jnp.float32).reshape(-1)
    y = y.astype(jnp.float32).reshape(-1)
    z = z.astype(jnp.float32).reshape(-1)
    return jnp.stack([x.sum(), y.sum(), z.sum(),
                      (x * x).sum(), (y * y).sum(), (z * z).sum(),
                      (x * z).sum(), (y * z).sum()])


def _ncc_sums(a, b, c):
    """Returns the 8 global sums: sA,sB,sC,sAA,sBB,sCC,sAC,sBC (f32)."""
    af, bf, cf = a.reshape(-1), b.reshape(-1), c.reshape(-1)
    n = af.shape[0]
    n_main = (n // LANE) * LANE

    if n_main == 0:
        # Tiny input: no point launching a kernel.
        return _sums8_plain(af, bf, cf)

    tail = None
    if n_main < n:
        # Rare sub-lane remainder (< 128 elements): tiny plain-JAX reduction
        # added to the kernel's sums instead of a whole-array pad copy via HBM.
        tail = _sums8_plain(af[n_main:], bf[n_main:], cf[n_main:])
        af, bf, cf = af[:n_main], bf[:n_main], cf[:n_main]

    A = af.reshape(-1, LANE)
    B = bf.reshape(-1, LANE)
    C = cf.reshape(-1, LANE)
    m_rows = A.shape[0]

    # Block rows: multiple of 8, as large as possible up to MAX_BLOCK_ROWS.
    tb = min(MAX_BLOCK_ROWS, ((m_rows + MIN_ROWS - 1) // MIN_ROWS) * MIN_ROWS)
    steps_total = (m_rows + tb - 1) // tb

    # Megacore split (v7x has 2 TCs): always split with cdiv when there are
    # >= 2 steps; the possible duplicate tail step is clamped + skipped.
    ncore = 2 if steps_total >= 2 else 1
    steps_per_core = (steps_total + ncore - 1) // ncore
    has_dup = ncore * steps_per_core > steps_total

    def in_index_map(cidx, i):
        # Clamp so the duplicate tail step never issues an out-of-range DMA;
        # its contribution is skipped inside the kernel.
        return (jnp.minimum(cidx * steps_per_core + i, steps_total - 1), 0)

    in_spec = pl.BlockSpec((tb, LANE), in_index_map)
    out_spec = pl.BlockSpec((None, 8, MIN_ROWS, LANE),
                            lambda cidx, i: (cidx, 0, 0, 0))

    n_elem = m_rows * LANE
    itemsize = jnp.dtype(a.dtype).itemsize
    cost = pl.CostEstimate(
        flops=13 * n_elem,
        transcendentals=0,
        bytes_accessed=3 * n_elem * itemsize + ncore * 8 * MIN_ROWS * LANE * 4,
    )

    acc = pl.pallas_call(
        _make_ncc_kernel(tb, m_rows, steps_per_core, steps_total, has_dup),
        out_shape=jax.ShapeDtypeStruct((ncore, 8, MIN_ROWS, LANE), jnp.float32),
        grid_spec=pltpu.PrefetchScalarGridSpec(
            num_scalar_prefetch=0,
            grid=(ncore, steps_per_core),
            in_specs=[in_spec, in_spec, in_spec],
            out_specs=out_spec,
        ),
        compiler_params=pltpu.CompilerParams(
            dimension_semantics=("parallel", "arbitrary"),
            vmem_limit_bytes=VMEM_LIMIT_BYTES,
        ),
        cost_estimate=cost,
    )(A, B, C)

    # Tiny final reduction (ncore, 8, 8, 128) -> (8,): plain-JAX glue.
    sums = jnp.sum(acc, axis=(0, 2, 3))
    if tail is not None:
        sums = sums + tail
    return sums


def reg_loss(a, b, c):
    """Pallas implementation of REG.forward(a, b, c) -> scalar float32."""
    assert a.shape == b.shape == c.shape
    n = jnp.float32(a.size)

    sums = _ncc_sums(a, b, c)
    sA, sB, sC = sums[0], sums[1], sums[2]
    sAA, sBB, sCC = sums[3], sums[4], sums[5]
    sAC, sBC = sums[6], sums[7]

    # sum((x - mean(x)) * (y - mean(y))) == sum(x*y) - sum(x)*sum(y)/N
    # Clamp variances at 0 to guard against tiny negative rounding -> sqrt NaN.
    # TODO(synk): for data with a large mean/spread ratio a two-pass
    # (subtract-mean) variant is more numerically robust than this one-pass form.
    var_a = jnp.maximum(sAA - sA * sA / n, 0.0)
    var_b = jnp.maximum(sBB - sB * sB / n, 0.0)
    var_c = jnp.maximum(sCC - sC * sC / n, 0.0)
    cov_ac = sAC - sA * sC / n
    cov_bc = sBC - sB * sC / n

    r1 = cov_ac / jnp.sqrt(var_a * var_c)
    r2 = cov_bc / jnp.sqrt(var_b * var_c)
    return r1 + r2


def _reg_loss_ref(a, b, c):
    """Pure-JAX reference mirroring the PyTorch corr2 exactly."""
    def corr2(x, y):
        x = x - x.mean()
        y = y - y.mean()
        return jnp.sum(x * y) / jnp.sqrt(jnp.sum(x * x) * jnp.sum(y * y))
    return corr2(a, c) + corr2(b, c)


if __name__ == "__main__":
    key = jax.random.PRNGKey(0)

    # Primary small example (NCHW) — aligned zero-copy fast path.
    ka, kb, kc = jax.random.split(key, 3)
    shape = (2, 4, 16, 16)
    a = jax.random.normal(ka, shape, dtype=jnp.float32)
    b = jax.random.normal(kb, shape, dtype=jnp.float32)
    c = 0.5 * a + 0.5 * b + 0.1 * jax.random.normal(kc, shape, dtype=jnp.float32)

    out = jax.block_until_ready(reg_loss(a, b, c))
    ref = _reg_loss_ref(a, b, c)
    assert jnp.allclose(out, ref, atol=1e-4, rtol=1e-4), (out, ref)

    # Ragged path: n % 128 != 0 (sub-lane tail) and m_rows not a multiple of 8
    # (ragged masked last block).
    k1, k2, k3 = jax.random.split(jax.random.PRNGKey(1), 3)
    a2 = jax.random.normal(k1, (1155,), dtype=jnp.float32)
    b2 = jax.random.normal(k2, (1155,), dtype=jnp.float32)
    c2 = 0.5 * a2 + 0.5 * b2 + 0.1 * jax.random.normal(k3, (1155,), dtype=jnp.float32)
    out2 = jax.block_until_ready(reg_loss(a2, b2, c2))
    ref2 = _reg_loss_ref(a2, b2, c2)
    assert jnp.allclose(out2, ref2, atol=1e-4, rtol=1e-4), (out2, ref2)

    # Multi-step + odd step count (cdiv megacore split with duplicate-step skip)
    # + ragged last block + sub-lane tail: validate the raw streamed sums.
    n3 = 9292 * LANE + 64
    k4, k5, k6 = jax.random.split(jax.random.PRNGKey(2), 3)
    a3 = jax.random.normal(k4, (n3,), dtype=jnp.float32)
    b3 = jax.random.normal(k5, (n3,), dtype=jnp.float32)
    c3 = jax.random.normal(k6, (n3,), dtype=jnp.float32)
    sums_k = jax.block_until_ready(_ncc_sums(a3, b3, c3))
    sums_r = _sums8_plain(a3, b3, c3)
    assert jnp.allclose(sums_k, sums_r, rtol=2e-3, atol=2.0), (sums_k, sums_r)

    print("KERNEL_OK")
</pallas_src>

<mosaic_0001>
module attributes {stable_mosaic.version = 11 : i64} {
  func.func @kernel(%arg0: i32, %arg1: i32, %arg2: memref<16x128xf32, #tpu.memory_space<vmem>>, %arg3: memref<16x128xf32, #tpu.memory_space<vmem>>, %arg4: memref<16x128xf32, #tpu.memory_space<vmem>>, %arg5: memref<1x8x8x128xf32, #tpu.memory_space<vmem>>) attributes {dimension_semantics = [#tpu.dimension_semantics<parallel>, #tpu.dimension_semantics<arbitrary>], iteration_bounds = array<i64: 1, 1>, scalar_prefetch = 0 : i64, scratch_operands = 0 : i64, tpu.core_type = #tpu.core_type<tc>, window_params = [{transform_indices = @transform_0, window_bounds = array<i64: 16, 128>}, {transform_indices = @transform_1, window_bounds = array<i64: 16, 128>}, {transform_indices = @transform_2, window_bounds = array<i64: 16, 128>}, {transform_indices = @transform_3, window_bounds = array<i64: 1, 8, 8, 128>}]} {
    %c0_i32 = arith.constant 0 : i32
    %0 = arith.cmpi eq, %arg1, %c0_i32 : i32
    %1 = arith.extui %0 : i1 to i32
    %c0_i32_0 = arith.constant 0 : i32
    %2 = arith.cmpi ne, %1, %c0_i32_0 : i32
    scf.if %2 {
      %cst_78 = arith.constant 0.000000e+00 : f32
      %83 = vector.broadcast %cst_78 : f32 to vector<8x8x128xf32>
      %c0_79 = arith.constant 0 : index
      %c0_80 = arith.constant 0 : index
      %c0_81 = arith.constant 0 : index
      %c0_82 = arith.constant 0 : index
      %84 = vector.load %arg5[%c0_79, %c0_80, %c0_81, %c0_82] : memref<1x8x8x128xf32, #tpu.memory_space<vmem>>, vector<1x8x8x128xf32>
      %85 = vector.shape_cast %84 : vector<1x8x8x128xf32> to vector<8x8x128xf32>
      %86 = vector.shape_cast %83 : vector<8x8x128xf32> to vector<1x8x8x128xf32>
      tpu.vector_store %arg5[%c0_79, %c0_80, %c0_81, %c0_82], %86 {strides = array<i32>} : memref<1x8x8x128xf32, #tpu.memory_space<vmem>>, vector<1x8x8x128xf32>,
    } else {
    }
    %c0 = arith.constant 0 : index
    %c0_1 = arith.constant 0 : index
    %3 = vector.load %arg2[%c0, %c0_1] : memref<16x128xf32, #tpu.memory_space<vmem>>, vector<16x128xf32>
    %c0_2 = arith.constant 0 : index
    %c0_3 = arith.constant 0 : index
    %4 = vector.load %arg3[%c0_2, %c0_3] : memref<16x128xf32, #tpu.memory_space<vmem>>, vector<16x128xf32>
    %c0_4 = arith.constant 0 : index
    %c0_5 = arith.constant 0 : index
    %5 = vector.load %arg4[%c0_4, %c0_5] : memref<16x128xf32, #tpu.memory_space<vmem>>, vector<16x128xf32>
    %c0_6 = arith.constant 0 : index
    %c0_7 = arith.constant 0 : index
    %c0_8 = arith.constant 0 : index
    %c0_9 = arith.constant 0 : index
    %6 = vector.load %arg5[%c0_6, %c0_7, %c0_8, %c0_9] : memref<1x8x8x128xf32, #tpu.memory_space<vmem>>, vector<1x1x8x128xf32>
    %7 = vector.shape_cast %6 : vector<1x1x8x128xf32> to vector<8x128xf32>
    %8 = vector.shape_cast %3 : vector<16x128xf32> to vector<1x2x8x128xf32>
    %cst = arith.constant dense<0.000000e+00> : vector<1x8x128xf32>
    %9 = vector.multi_reduction <add>, %8, %cst [1] : vector<1x2x8x128xf32> to vector<1x8x128xf32>
    %cst_10 = arith.constant dense<0.000000e+00> : vector<8x128xf32>
    %10 = vector.multi_reduction <add>, %9, %cst_10 [0] : vector<1x8x128xf32> to vector<8x128xf32>
    %11 = arith.addf %7, %10 : vector<8x128xf32>
    %c0_11 = arith.constant 0 : index
    %c0_12 = arith.constant 0 : index
    %c0_13 = arith.constant 0 : index
    %c0_14 = arith.constant 0 : index
    %12 = vector.load %arg5[%c0_11, %c0_12, %c0_13, %c0_14] : memref<1x8x8x128xf32, #tpu.memory_space<vmem>>, vector<1x1x8x128xf32>
    %13 = vector.shape_cast %12 : vector<1x1x8x128xf32> to vector<8x128xf32>
    %14 = vector.shape_cast %11 : vector<8x128xf32> to vector<1x1x8x128xf32>
    tpu.vector_store %arg5[%c0_11, %c0_12, %c0_13, %c0_14], %14 {strides = array<i32>} : memref<1x8x8x128xf32, #tpu.memory_space<vmem>>, vector<1x1x8x128xf32>,
    %c0_15 = arith.constant 0 : index
    %c1 = arith.constant 1 : index
    %c0_16 = arith.constant 0 : index
    %c0_17 = arith.constant 0 : index
    %15 = vector.load %arg5[%c0_15, %c1, %c0_16, %c0_17] : memref<1x8x8x128xf32, #tpu.memory_space<vmem>>, vector<1x1x8x128xf32>
    %16 = vector.shape_cast %15 : vector<1x1x8x128xf32> to vector<8x128xf32>
    %17 = vector.shape_cast %4 : vector<16x128xf32> to vector<1x2x8x128xf32>
    %cst_18 = arith.constant dense<0.000000e+00> : vector<1x8x128xf32>
    %18 = vector.multi_reduction <add>, %17, %cst_18 [1] : vector<1x2x8x128xf32> to vector<1x8x128xf32>
    %cst_19 = arith.constant dense<0.000000e+00> : vector<8x128xf32>
    %19 = vector.multi_reduction <add>, %18, %cst_19 [0] : vector<1x8x128xf32> to vector<8x128xf32>
    %20 = arith.addf %16, %19 : vector<8x128xf32>
    %c0_20 = arith.constant 0 : index
    %c1_21 = arith.constant 1 : index
    %c0_22 = arith.constant 0 : index
    %c0_23 = arith.constant 0 : index
    %21 = vector.load %arg5[%c0_20, %c1_21, %c0_22, %c0_23] : memref<1x8x8x128xf32, #tpu.memory_space<vmem>>, vector<1x1x8x128xf32>
    %22 = vector.shape_cast %21 : vector<1x1x8x128xf32> to vector<8x128xf32>
    %23 = vector.shape_cast %20 : vector<8x128xf32> to vector<1x1x8x128xf32>
    tpu.vector_store %arg5[%c0_20, %c1_21, %c0_22, %c0_23], %23 {strides = array<i32>} : memref<1x8x8x128xf32, #tpu.memory_space<vmem>>, vector<1x1x8x128xf32>,
    %c0_24 = arith.constant 0 : index
    %c2 = arith.constant 2 : index
    %c0_25 = arith.constant 0 : index
    %c0_26 = arith.constant 0 : index
    %24 = vector.load %arg5[%c0_24, %c2, %c0_25, %c0_26] : memref<1x8x8x128xf32, #tpu.memory_space<vmem>>, vector<1x1x8x128xf32>
    %25 = vector.shape_cast %24 : vector<1x1x8x128xf32> to vector<8x128xf32>
    %26 = vector.shape_cast %5 : vector<16x128xf32> to vector<1x2x8x128xf32>
    %cst_27 = arith.constant dense<0.000000e+00> : vector<1x8x128xf32>
    %27 = vector.multi_reduction <add>, %26, %cst_27 [1] : vector<1x2x8x128xf32> to vector<1x8x128xf32>
    %cst_28 = arith.constant dense<0.000000e+00> : vector<8x128xf32>
    %28 = vector.multi_reduction <add>, %27, %cst_28 [0] : vector<1x8x128xf32> to vector<8x128xf32>
    %29 = arith.addf %25, %28 : vector<8x128xf32>
    %c0_29 = arith.constant 0 : index
    %c2_30 = arith.constant 2 : index
    %c0_31 = arith.constant 0 : index
    %c0_32 = arith.constant 0 : index
    %30 = vector.load %arg5[%c0_29, %c2_30, %c0_31, %c0_32] : memref<1x8x8x128xf32, #tpu.memory_space<vmem>>, vector<1x1x8x128xf32>
    %31 = vector.shape_cast %30 : vector<1x1x8x128xf32> to vector<8x128xf32>
    %32 = vector.shape_cast %29 : vector<8x128xf32> to vector<1x1x8x128xf32>
    tpu.vector_store %arg5[%c0_29, %c2_30, %c0_31, %c0_32], %32 {strides = array<i32>} : memref<1x8x8x128xf32, #tpu.memory_space<vmem>>, vector<1x1x8x128xf32>,
    %c0_33 = arith.constant 0 : index
    %c3 = arith.constant 3 : index
    %c0_34 = arith.constant 0 : index
    %c0_35 = arith.constant 0 : index
    %33 = vector.load %arg5[%c0_33, %c3, %c0_34, %c0_35] : memref<1x8x8x128xf32, #tpu.memory_space<vmem>>, vector<1x1x8x128xf32>
    %34 = vector.shape_cast %33 : vector<1x1x8x128xf32> to vector<8x128xf32>
    %35 = arith.mulf %3, %3 : vector<16x128xf32>
    %36 = vector.shape_cast %35 : vector<16x128xf32> to vector<1x2x8x128xf32>
    %cst_36 = arith.constant dense<0.000000e+00> : vector<1x8x128xf32>
    %37 = vector.multi_reduction <add>, %36, %cst_36 [1] : vector<1x2x8x128xf32> to vector<1x8x128xf32>
    %cst_37 = arith.constant dense<0.000000e+00> : vector<8x128xf32>
    %38 = vector.multi_reduction <add>, %37, %cst_37 [0] : vector<1x8x128xf32> to vector<8x128xf32>
    %39 = arith.addf %34, %38 : vector<8x128xf32>
    %c0_38 = arith.constant 0 : index
    %c3_39 = arith.constant 3 : index
    %c0_40 = arith.constant 0 : index
    %c0_41 = arith.constant 0 : index
    %40 = vector.load %arg5[%c0_38, %c3_39, %c0_40, %c0_41] : memref<1x8x8x128xf32, #tpu.memory_space<vmem>>, vector<1x1x8x128xf32>
    %41 = vector.shape_cast %40 : vector<1x1x8x128xf32> to vector<8x128xf32>
    %42 = vector.shape_cast %39 : vector<8x128xf32> to vector<1x1x8x128xf32>
    tpu.vector_store %arg5[%c0_38, %c3_39, %c0_40, %c0_41], %42 {strides = array<i32>} : memref<1x8x8x128xf32, #tpu.memory_space<vmem>>, vector<1x1x8x128xf32>,
    %c0_42 = arith.constant 0 : index
    %c4 = arith.constant 4 : index
    %c0_43 = arith.constant 0 : index
    %c0_44 = arith.constant 0 : index
    %43 = vector.load %arg5[%c0_42, %c4, %c0_43, %c0_44] : memref<1x8x8x128xf32, #tpu.memory_space<vmem>>, vector<1x1x8x128xf32>
    %44 = vector.shape_cast %43 : vector<1x1x8x128xf32> to vector<8x128xf32>
    %45 = arith.mulf %4, %4 : vector<16x128xf32>
    %46 = vector.shape_cast %45 : vector<16x128xf32> to vector<1x2x8x128xf32>
    %cst_45 = arith.constant dense<0.000000e+00> : vector<1x8x128xf32>
    %47 = vector.multi_reduction <add>, %46, %cst_45 [1] : vector<1x2x8x128xf32> to vector<1x8x128xf32>
    %cst_46 = arith.constant dense<0.000000e+00> : vector<8x128xf32>
    %48 = vector.multi_reduction <add>, %47, %cst_46 [0] : vector<1x8x128xf32> to vector<8x128xf32>
    %49 = arith.addf %44, %48 : vector<8x128xf32>
    %c0_47 = arith.constant 0 : index
    %c4_48 = arith.constant 4 : index
    %c0_49 = arith.constant 0 : index
    %c0_50 = arith.constant 0 : index
    %50 = vector.load %arg5[%c0_47, %c4_48, %c0_49, %c0_50] : memref<1x8x8x128xf32, #tpu.memory_space<vmem>>, vector<1x1x8x128xf32>
    %51 = vector.shape_cast %50 : vector<1x1x8x128xf32> to vector<8x128xf32>
    %52 = vector.shape_cast %49 : vector<8x128xf32> to vector<1x1x8x128xf32>
    tpu.vector_store %arg5[%c0_47, %c4_48, %c0_49, %c0_50], %52 {strides = array<i32>} : memref<1x8x8x128xf32, #tpu.memory_space<vmem>>, vector<1x1x8x128xf32>,
    %c0_51 = arith.constant 0 : index
    %c5 = arith.constant 5 : index
    %c0_52 = arith.constant 0 : index
    %c0_53 = arith.constant 0 : index
    %53 = vector.load %arg5[%c0_51, %c5, %c0_52, %c0_53] : memref<1x8x8x128xf32, #tpu.memory_space<vmem>>, vector<1x1x8x128xf32>
    %54 = vector.shape_cast %53 : vector<1x1x8x128xf32> to vector<8x128xf32>
    %55 = arith.mulf %5, %5 : vector<16x128xf32>
    %56 = vector.shape_cast %55 : vector<16x128xf32> to vector<1x2x8x128xf32>
    %cst_54 = arith.constant dense<0.000000e+00> : vector<1x8x128xf32>
    %57 = vector.multi_reduction <add>, %56, %cst_54 [1] : vector<1x2x8x128xf32> to vector<1x8x128xf32>
    %cst_55 = arith.constant dense<0.000000e+00> : vector<8x128xf32>
    %58 = vector.multi_reduction <add>, %57, %cst_55 [0] : vector<1x8x128xf32> to vector<8x128xf32>
    %59 = arith.addf %54, %58 : vector<8x128xf32>
    %c0_56 = arith.constant 0 : index
    %c5_57 = arith.constant 5 : index
    %c0_58 = arith.constant 0 : index
    %c0_59 = arith.constant 0 : index
    %60 = vector.load %arg5[%c0_56, %c5_57, %c0_58, %c0_59] : memref<1x8x8x128xf32, #tpu.memory_space<vmem>>, vector<1x1x8x128xf32>
    %61 = vector.shape_cast %60 : vector<1x1x8x128xf32> to vector<8x128xf32>
    %62 = vector.shape_cast %59 : vector<8x128xf32> to vector<1x1x8x128xf32>
    tpu.vector_store %arg5[%c0_56, %c5_57, %c0_58, %c0_59], %62 {strides = array<i32>} : memref<1x8x8x128xf32, #tpu.memory_space<vmem>>, vector<1x1x8x128xf32>,
    %c0_60 = arith.constant 0 : index
    %c6 = arith.constant 6 : index
    %c0_61 = arith.constant 0 : index
    %c0_62 = arith.constant 0 : index
    %63 = vector.load %arg5[%c0_60, %c6, %c0_61, %c0_62] : memref<1x8x8x128xf32, #tpu.memory_space<vmem>>, vector<1x1x8x128xf32>
    %64 = vector.shape_cast %63 : vector<1x1x8x128xf32> to vector<8x128xf32>
    %65 = arith.mulf %3, %5 : vector<16x128xf32>
    %66 = vector.shape_cast %65 : vector<16x128xf32> to vector<1x2x8x128xf32>
    %cst_63 = arith.constant dense<0.000000e+00> : vector<1x8x128xf32>
    %67 = vector.multi_reduction <add>, %66, %cst_63 [1] : vector<1x2x8x128xf32> to vector<1x8x128xf32>
    %cst_64 = arith.constant dense<0.000000e+00> : vector<8x128xf32>
    %68 = vector.multi_reduction <add>, %67, %cst_64 [0] : vector<1x8x128xf32> to vector<8x128xf32>
    %69 = arith.addf %64, %68 : vector<8x128xf32>
    %c0_65 = arith.constant 0 : index
    %c6_66 = arith.constant 6 : index
    %c0_67 = arith.constant 0 : index
    %c0_68 = arith.constant 0 : index
    %70 = vector.load %arg5[%c0_65, %c6_66, %c0_67, %c0_68] : memref<1x8x8x128xf32, #tpu.memory_space<vmem>>, vector<1x1x8x128xf32>
    %71 = vector.shape_cast %70 : vector<1x1x8x128xf32> to vector<8x128xf32>
    %72 = vector.shape_cast %69 : vector<8x128xf32> to vector<1x1x8x128xf32>
    tpu.vector_store %arg5[%c0_65, %c6_66, %c0_67, %c0_68], %72 {strides = array<i32>} : memref<1x8x8x128xf32, #tpu.memory_space<vmem>>, vector<1x1x8x128xf32>,
    %c0_69 = arith.constant 0 : index
    %c7 = arith.constant 7 : index
    %c0_70 = arith.constant 0 : index
    %c0_71 = arith.constant 0 : index
    %73 = vector.load %arg5[%c0_69, %c7, %c0_70, %c0_71] : memref<1x8x8x128xf32, #tpu.memory_space<vmem>>, vector<1x1x8x128xf32>
    %74 = vector.shape_cast %73 : vector<1x1x8x128xf32> to vector<8x128xf32>
    %75 = arith.mulf %4, %5 : vector<16x128xf32>
    %76 = vector.shape_cast %75 : vector<16x128xf32> to vector<1x2x8x128xf32>
    %cst_72 = arith.constant dense<0.000000e+00> : vector<1x8x128xf32>
    %77 = vector.multi_reduction <add>, %76, %cst_72 [1] : vector<1x2x8x128xf32> to vector<1x8x128xf32>
    %cst_73 = arith.constant dense<0.000000e+00> : vector<8x128xf32>
    %78 = vector.multi_reduction <add>, %77, %cst_73 [0] : vector<1x8x128xf32> to vector<8x128xf32>
    %79 = arith.addf %74, %78 : vector<8x128xf32>
    %c0_74 = arith.constant 0 : index
    %c7_75 = arith.constant 7 : index
    %c0_76 = arith.constant 0 : index
    %c0_77 = arith.constant 0 : index
    %80 = vector.load %arg5[%c0_74, %c7_75, %c0_76, %c0_77] : memref<1x8x8x128xf32, #tpu.memory_space<vmem>>, vector<1x1x8x128xf32>
    %81 = vector.shape_cast %80 : vector<1x1x8x128xf32> to vector<8x128xf32>
    %82 = vector.shape_cast %79 : vector<8x128xf32> to vector<1x1x8x128xf32>
    tpu.vector_store %arg5[%c0_74, %c7_75, %c0_76, %c0_77], %82 {strides = array<i32>} : memref<1x8x8x128xf32, #tpu.memory_space<vmem>>, vector<1x1x8x128xf32>,
    return
  }
  func.func @transform_0(%arg0: i32, %arg1: i32) -> (i32, i32) {
    %c1_i32 = arith.constant 1 : i32
    %0 = arith.muli %arg0, %c1_i32 : i32
    %1 = arith.addi %0, %arg1 : i32
    %c0_i32 = arith.constant 0 : i32
    %2 = arith.minsi %1, %c0_i32 : i32
    %c0_i32_0 = arith.constant 0 : i32
    %c0_i32_1 = arith.constant 0 : i32
    return %2, %c0_i32_0 : i32, i32
  }
  func.func @transform_1(%arg0: i32, %arg1: i32) -> (i32, i32) {
    %c1_i32 = arith.constant 1 : i32
    %0 = arith.muli %arg0, %c1_i32 : i32
    %1 = arith.addi %0, %arg1 : i32
    %c0_i32 = arith.constant 0 : i32
    %2 = arith.minsi %1, %c0_i32 : i32
    %c0_i32_0 = arith.constant 0 : i32
    %c0_i32_1 = arith.constant 0 : i32
    return %2, %c0_i32_0 : i32, i32
  }
  func.func @transform_2(%arg0: i32, %arg1: i32) -> (i32, i32) {
    %c1_i32 = arith.constant 1 : i32
    %0 = arith.muli %arg0, %c1_i32 : i32
    %1 = arith.addi %0, %arg1 : i32
    %c0_i32 = arith.constant 0 : i32
    %2 = arith.minsi %1, %c0_i32 : i32
    %c0_i32_0 = arith.constant 0 : i32
    %c0_i32_1 = arith.constant 0 : i32
    return %2, %c0_i32_0 : i32, i32
  }
  func.func @transform_3(%arg0: i32, %arg1: i32) -> (i32, i32, i32, i32) {
    %c0_i32 = arith.constant 0 : i32
    %c0_i32_0 = arith.constant 0 : i32
    %c0_i32_1 = arith.constant 0 : i32
    %c0_i32_2 = arith.constant 0 : i32
    return %arg0, %c0_i32, %c0_i32_0, %c0_i32_1 : i32, i32, i32, i32
  }
}

</mosaic_0001>

<bundles_post_ra>
// kernel: tpu_custom_call.1
= control target key start
LH: loop header
LB: loop body
LE: loop exit
PB: predicated region body
PF: predicated region fallthrough
CT: control target
= control target key end

     0   :  { %8 = vsyncpa [#allocation3], 0  ;;  %s352_s0 = inlined_call_operand.hbm [shape: f32[16,128], index: 0, kind: input, shape index: {}]   ;;  %s353_s1 = inlined_call_operand.hbm [shape: f32[16,128], index: 1, kind: input, shape index: {}]   ;;  %s354_s2 = inlined_call_operand.hbm [shape: f32[16,128], index: 2, kind: input, shape index: {}]   ;;  %s355_s3 = inlined_call_operand.hbm [shape: f32[1,8,8,128], index: 3, kind: output, shape index: {}]  }
   0x1   :  { %9 = vsyncpa [#allocation6], 0 }
   0x2   :  { %10 = vsyncpa [#allocation4], 0  ;;  %s40_s14 = sshll.u32 %s353_s1, 4  ;;  %s302_s15 = smov [#allocation5]   ;;  %s41_s14 = int_to_ptr.hbm [resolvable:$true] %s40_s14 }
   0x3   :  { %s42_s16 = sshll.u32 %s302_s15, 4  ;;  %s21_s19 = sshll.u32 %s352_s0, 4  ;;  %s43_s16 = int_to_ptr.vmem [resolvable:$true] %s42_s16  ;;  %s22_s19 = int_to_ptr.hbm [resolvable:$true] %s21_s19 }
   0x4   :  { %s303_s20 = smov 128   ;;  %s304_s21 = smov 8  }
   0x5   :  { %48 = dma.hbm_to_vmem [thread:$0]  %s41_s14, 256, %s43_s16, [#allocation6], %s303_s20, %s303_s20, %s304_s21  }
   0x6   :  { %s305_s22 = smov [#allocation2]   ;;  %s59_s1 = sshll.u32 %s354_s2, 4  ;;  %s60_s1 = int_to_ptr.hbm [resolvable:$true] %s59_s1 }
   0x7   :  { %s23_s23 = sshll.u32 %s305_s22, 4  ;;  %s306_s0 = smov [#allocation7]   ;;  %s24_s23 = int_to_ptr.vmem [resolvable:$true] %s23_s23 }
   0x8   :  { %29 = dma.hbm_to_vmem [thread:$0]  %s22_s19, 256, %s24_s23, [#allocation3], %s303_s20, %s303_s20, %s304_s21  }
   0x9   :  { %s61_s26 = sshll.u32 %s306_s0, 4  ;;  %s62_s26 = int_to_ptr.vmem [resolvable:$true] %s61_s26 }
   0xa   :  { %67 = dma.hbm_to_vmem [thread:$0]  %s60_s1, 256, %s62_s26, [#allocation6], %s303_s20, %s303_s20, %s304_s21  }
   0xb   :  { %296 = dma.done.wait [#allocation3], 256  }
   0xc   :  { %297 = vsyncadd [#allocation3], 4294967040 }
   0xd   :  { %298 = dma.done.wait [#allocation6], 512  }
   0xe   :  { %299 = vsyncadd [#allocation6], 4294966784  ;;  %v104_v0 = vld [vmem:[#allocation2] sm:$0xff]  ;;  %v105_v1 = vld [vmem:[#allocation2 + $0x8] sm:$0xff]  ;;  %s307_s2 = smov [#allocation8]   ;;  %s173_s30 = sshll.u32 %s355_s3, 4  ;;  %s174_s30 = int_to_ptr.hbm [resolvable:$true] %s173_s30 }
   0xf   :  { %v106_v2 = vld [vmem:[#allocation5] sm:$0xff]  ;;  %v111_v3 = vadd.f32 %v105_v1, %v104_v0  ;;  %v107_v4 = vld [vmem:[#allocation5 + $0x8] sm:$0xff]  ;;  %v108_v5 = vld [vmem:[#allocation7] sm:$0xff]  ;;  %v129_v7 = vmul.f32 %v104_v0, %v104_v0  ;;  %v130_v8 = vmul.f32 %v105_v1, %v105_v1  ;;  %s171_s27 = sshll.u32 %s307_s2, 4  ;;  %s172_s27 = int_to_ptr.vmem [resolvable:$true] %s171_s27 }
  0x10   :  { %v109_v6 = vld [vmem:[#allocation7 + $0x8] sm:$0xff]  ;;  %v137_v9 = vmul.f32 %v106_v2, %v106_v2  ;;  %v117_v10 = vadd.f32 %v107_v4, %v106_v2  ;;  %v138_v12 = vmul.f32 %v107_v4, %v107_v4  ;;  %v145_v13 = vmul.f32 %v108_v5, %v108_v5 }
  0x11   :  { %v123_v11 = vadd.f32 %v109_v6, %v108_v5  ;;  %v131_v14 = vadd.f32 %v130_v8, %v129_v7  ;;  %v146_v15 = vmul.f32 %v109_v6, %v109_v6  ;;  %v153_v16 = vmul.f32 %v108_v5, %v104_v0  ;;  %114 = vst [vmem:[#allocation8] sm:$0xff] %v111_v3 }
  0x12   :  { %v139_v17 = vadd.f32 %v138_v12, %v137_v9  ;;  %v154_v18 = vmul.f32 %v109_v6, %v105_v1  ;;  %v161_v20 = vmul.f32 %v108_v5, %v106_v2  ;;  %v162_v21 = vmul.f32 %v109_v6, %v107_v4  ;;  %120 = vst [vmem:[#allocation8 + $0x8] sm:$0xff] %v117_v10 }
  0x13   :  { %v147_v19 = vadd.f32 %v146_v15, %v145_v13  ;;  %126 = vst [vmem:[#allocation8 + $0x10] sm:$0xff] %v123_v11 }
  0x14   :  { %v155_v22 = vadd.f32 %v154_v18, %v153_v16  ;;  %v163_v23 = vadd.f32 %v162_v21, %v161_v20  ;;  %134 = vst [vmem:[#allocation8 + $0x18] sm:$0xff] %v131_v14 }
  0x15   :  { %142 = vst [vmem:[#allocation8 + $0x20] sm:$0xff] %v139_v17 }
  0x16   :  { %150 = vst [vmem:[#allocation8 + $0x28] sm:$0xff] %v147_v19 }
  0x17   :  { %158 = vst [vmem:[#allocation8 + $0x30] sm:$0xff] %v155_v22 }
  0x18   :  { %166 = vst [vmem:[#allocation8 + $0x38] sm:$0xff] %v163_v23 }
  0x19   :  { %179 = dma.vmem_to_hbm [thread:$0]  %s172_s27, 1024, %s174_s30, [#allocation4], %s303_s20, %s303_s20, %s304_s21  }
  0x1a   :  { %300 = dma.done.wait [#allocation4], 1024  }
  0x1b   :  { %301 = vsyncadd [#allocation4], 4294966272 }
  0x1c   :  { %184 = vsyncpa [#allocation3], 1 }
  0x1d   :  { %185 = vsyncpa [#allocation6], 1 }
  0x1e   :  { %186 = vsyncpa [#allocation4], 1 }

</bundles_post_ra>
